<compile_context>
chip_gen: v7x
topology: tpu7x:2x2x1
jax: 0.10.0
libtpu: 0.0.40
codegen_flags: <defaults>
</compile_context>

<pallas_src>
import math
import functools

import jax
import jax.numpy as jnp
from jax.experimental import pallas as pl
from jax.experimental.pallas import tpu as pltpu


# ----------------------------------------------------------------------------
# Small helpers
# ----------------------------------------------------------------------------
def _gelu(x):
    """tanh-approximate GELU (EUP-friendly: one tanh, rest VPU mul/add)."""
    c = jnp.asarray(math.sqrt(2.0 / math.pi), dtype=x.dtype)
    a = jnp.asarray(0.044715, dtype=x.dtype)
    return 0.5 * x * (1.0 + jnp.tanh(c * (x + a * x * x * x)))


def _pick_tile(dim, target, align=128):
    """Largest `align`-multiple divisor of `dim` that is <= target."""
    if dim <= target:
        return dim
    t = (target // align) * align
    while t >= align:
        if dim % t == 0:
            return t
        t -= align
    return dim  # no aligned divisor; fall back to the full extent


# ----------------------------------------------------------------------------
# Kernel 1: out = GELU(x @ W + b) * scale + shift      (Linear + GELU + BN)
# ----------------------------------------------------------------------------
def _linear_gelu_affine_kernel(x_ref, w_ref, b_ref, s_ref, t_ref,
                               o_ref, acc_ref, *, apply_gelu):
    k = pl.program_id(1)

    @pl.when(k == 0)
    def _init():
        acc_ref[...] = jnp.zeros_like(acc_ref)

    acc_ref[...] += jnp.dot(x_ref[...], w_ref[...],
                            preferred_element_type=jnp.float32)

    @pl.when(k == pl.num_programs(1) - 1)
    def _finalize():
        y = acc_ref[...] + b_ref[...].astype(jnp.float32)
        if apply_gelu:
            y = _gelu(y)
        y = y * s_ref[...].astype(jnp.float32) + t_ref[...].astype(jnp.float32)
        o_ref[...] = y.astype(o_ref.dtype)


def fused_linear_gelu_affine(x, w, b, scale, shift, *, apply_gelu=True,
                             out_dtype=None, block_n=1024, block_k=512):
    """x: (B, K), w: (K, N) [(in, out) layout], b/scale/shift: (N,)."""
    B, K = x.shape
    Kw, N = w.shape
    assert K == Kw, (K, Kw)
    out_dtype = out_dtype or x.dtype

    tn = _pick_tile(N, block_n)   # lane-dense output blocks (multiple of 128)
    tk = _pick_tile(K, block_k)   # ~2 MiB f32 weight blocks -> fits scoped VMEM
    grid = (N // tn, K // tk)     # reduction axis last

    kernel = functools.partial(_linear_gelu_affine_kernel, apply_gelu=apply_gelu)
    return pl.pallas_call(
        kernel,
        out_shape=jax.ShapeDtypeStruct((B, N), out_dtype),
        grid_spec=pltpu.PrefetchScalarGridSpec(
            num_scalar_prefetch=0,
            grid=grid,
            in_specs=[
                pl.BlockSpec((B, tk), lambda j, k: (0, k)),   # activations
                pl.BlockSpec((tk, tn), lambda j, k: (k, j)),  # weight stream
                pl.BlockSpec((1, tn), lambda j, k: (0, j)),   # bias
                pl.BlockSpec((1, tn), lambda j, k: (0, j)),   # BN scale
                pl.BlockSpec((1, tn), lambda j, k: (0, j)),   # BN shift
            ],
            out_specs=pl.BlockSpec((B, tn), lambda j, k: (0, j)),
            scratch_shapes=[pltpu.VMEM((B, tn), jnp.float32)],
        ),
        compiler_params=pltpu.CompilerParams(
            dimension_semantics=("parallel", "arbitrary")),
    )(x, w, b.reshape(1, N), scale.reshape(1, N), shift.reshape(1, N))


# ----------------------------------------------------------------------------
# Kernel 2: score = GELU(z @ W2 + b2) @ W3 + b3          (small fused head)
# ----------------------------------------------------------------------------
def _head_kernel(z_ref, w2_ref, b2_ref, w3_ref, b3_ref, o_ref):
    h = jnp.dot(z_ref[...], w2_ref[...], preferred_element_type=jnp.float32)
    h = _gelu(h + b2_ref[...].astype(jnp.float32))
    s = jnp.dot(h.astype(w3_ref.dtype), w3_ref[...],
                preferred_element_type=jnp.float32)
    o_ref[...] = (s + b3_ref[...].astype(jnp.float32)).astype(o_ref.dtype)


def fused_head(z, w2, b2, w3, b3, *, out_dtype=None):
    B, H1 = z.shape
    _, H2 = w2.shape
    _, NO = w3.shape
    out_dtype = out_dtype or z.dtype
    # W2 (2048x512 f32 = 4 MiB) fits a single VMEM block even double-buffered.
    return pl.pallas_call(
        _head_kernel,
        out_shape=jax.ShapeDtypeStruct((B, NO), out_dtype),
        grid_spec=pltpu.PrefetchScalarGridSpec(
            num_scalar_prefetch=0,
            grid=(1,),
            in_specs=[
                pl.BlockSpec((B, H1), lambda i: (0, 0)),
                pl.BlockSpec((H1, H2), lambda i: (0, 0)),
                pl.BlockSpec((1, H2), lambda i: (0, 0)),
                pl.BlockSpec((H2, NO), lambda i: (0, 0)),
                pl.BlockSpec((1, NO), lambda i: (0, 0)),
            ],
            out_specs=pl.BlockSpec((B, NO), lambda i: (0, 0)),
        ),
        compiler_params=pltpu.CompilerParams(
            dimension_semantics=("arbitrary",)),
    )(z, w2, b2.reshape(1, H2), w3, b3.reshape(1, NO))


# ----------------------------------------------------------------------------
# Full forward (mirrors Projection.forward)
# ----------------------------------------------------------------------------
def projection_forward(pep_feats, hla_feats, params, *, eps=1e-5,
                       block_n=1024, block_k=512):
    B = pep_feats.shape[0]
    # concat + flatten is pure layout; weights are stored (in, out) so the
    # matmuls are x @ W (torch Linear stores (out, in) and does x @ W.T).
    x = jnp.concatenate(
        [pep_feats.reshape(B, -1), hla_feats.reshape(B, -1)], axis=1)

    # Fold eval-mode BatchNorm1d into a per-channel affine applied after GELU.
    inv_std = jax.lax.rsqrt(params["bn_var"].astype(jnp.float32) + eps)
    bn_scale = params["bn_gamma"].astype(jnp.float32) * inv_std
    bn_shift = (params["bn_beta"].astype(jnp.float32)
                - params["bn_mean"].astype(jnp.float32) * bn_scale)

    z = fused_linear_gelu_affine(x, params["w1"], params["b1"],
                                 bn_scale, bn_shift, apply_gelu=True,
                                 out_dtype=x.dtype,
                                 block_n=block_n, block_k=block_k)
    score = fused_head(z, params["w2"], params["b2"],
                       params["w3"], params["b3"], out_dtype=x.dtype)
    return score


# ----------------------------------------------------------------------------
# Demo / self-test (small shapes consistent with the module)
# ----------------------------------------------------------------------------
if __name__ == "__main__":
    # Scaled-down Projection: d_model=32, pep_len=4, hla_len=12 -> F=512,
    # hidden sizes 256 -> 128 -> 1 (mirrors 197632 -> 2048 -> 512 -> 1).
    B, PEP, HLA, D = 2, 4, 12, 32
    F = (PEP + HLA) * D
    H1, H2 = 256, 128
    EPS = 1e-5

    key = jax.random.PRNGKey(0)
    ks = jax.random.split(key, 12)
    pep = jax.random.normal(ks[0], (B, PEP, D), dtype=jnp.float32)
    hla = jax.random.normal(ks[1], (B, HLA, D), dtype=jnp.float32)
    params = dict(
        w1=jax.random.normal(ks[2], (F, H1), jnp.float32) / math.sqrt(F),
        b1=0.01 * jax.random.normal(ks[3], (H1,), jnp.float32),
        bn_gamma=1.0 + 0.1 * jax.random.normal(ks[4], (H1,), jnp.float32),
        bn_beta=0.1 * jax.random.normal(ks[5], (H1,), jnp.float32),
        bn_mean=0.05 * jax.random.normal(ks[6], (H1,), jnp.float32),
        bn_var=jnp.abs(1.0 + 0.1 * jax.random.normal(ks[7], (H1,), jnp.float32)),
        w2=jax.random.normal(ks[8], (H1, H2), jnp.float32) / math.sqrt(H1),
        b2=0.01 * jax.random.normal(ks[9], (H2,), jnp.float32),
        w3=jax.random.normal(ks[10], (H2, 1), jnp.float32) / math.sqrt(H2),
        b3=0.01 * jax.random.normal(ks[11], (1,), jnp.float32),
    )

    out = projection_forward(pep, hla, params, eps=EPS)
    out = jax.block_until_ready(out)
    assert out.shape == (B, 1), out.shape

    # Pure-JAX reference with identical math (eval-mode BN, tanh GELU).
    x = jnp.concatenate([pep.reshape(B, -1), hla.reshape(B, -1)], axis=1)
    s = params["bn_gamma"] * jax.lax.rsqrt(params["bn_var"] + EPS)
    t = params["bn_beta"] - params["bn_mean"] * s
    h = _gelu(x @ params["w1"] + params["b1"]) * s + t
    h = _gelu(h @ params["w2"] + params["b2"])
    ref = h @ params["w3"] + params["b3"]

    assert jnp.allclose(out, ref, atol=1e-4, rtol=1e-4), (out, ref)
    print("KERNEL_OK")
</pallas_src>

<mosaic_0001>
module attributes {stable_mosaic.version = 11 : i64} {
  func.func @_linear_gelu_affine_kernel(%arg0: i32, %arg1: i32, %arg2: memref<2x512xf32, #tpu.memory_space<vmem>>, %arg3: memref<512x256xf32, #tpu.memory_space<vmem>>, %arg4: memref<1x256xf32, #tpu.memory_space<vmem>>, %arg5: memref<1x256xf32, #tpu.memory_space<vmem>>, %arg6: memref<1x256xf32, #tpu.memory_space<vmem>>, %arg7: memref<2x256xf32, #tpu.memory_space<vmem>>, %arg8: memref<2x256xf32, #tpu.memory_space<vmem>>) attributes {dimension_semantics = [#tpu.dimension_semantics<parallel>, #tpu.dimension_semantics<arbitrary>], iteration_bounds = array<i64: 1, 1>, scalar_prefetch = 0 : i64, scratch_operands = 1 : i64, tpu.core_type = #tpu.core_type<tc>, window_params = [{transform_indices = @transform_0, window_bounds = array<i64: 2, 512>}, {transform_indices = @transform_1, window_bounds = array<i64: 512, 256>}, {transform_indices = @transform_2, window_bounds = array<i64: 1, 256>}, {transform_indices = @transform_3, window_bounds = array<i64: 1, 256>}, {transform_indices = @transform_4, window_bounds = array<i64: 1, 256>}, {transform_indices = @transform_5, window_bounds = array<i64: 2, 256>}]} {
    %c0_i32 = arith.constant 0 : i32
    %0 = arith.cmpi eq, %arg1, %c0_i32 : i32
    %1 = arith.extui %0 : i1 to i32
    %c0_i32_0 = arith.constant 0 : i32
    %2 = arith.cmpi ne, %1, %c0_i32_0 : i32
    scf.if %2 {
      %cst_10 = arith.constant 0.000000e+00 : f32
      %12 = vector.broadcast %cst_10 : f32 to vector<2x256xf32>
      %c0_11 = arith.constant 0 : index
      %c0_12 = arith.constant 0 : index
      %13 = vector.load %arg8[%c0_11, %c0_12] : memref<2x256xf32, #tpu.memory_space<vmem>>, vector<2x256xf32>
      tpu.vector_store %arg8[%c0_11, %c0_12], %12 {strides = array<i32>} : memref<2x256xf32, #tpu.memory_space<vmem>>, vector<2x256xf32>,
    } else {
    }
    %c0 = arith.constant 0 : index
    %c0_1 = arith.constant 0 : index
    %3 = vector.load %arg8[%c0, %c0_1] : memref<2x256xf32, #tpu.memory_space<vmem>>, vector<2x256xf32>
    %c0_2 = arith.constant 0 : index
    %c0_3 = arith.constant 0 : index
    %4 = vector.load %arg2[%c0_2, %c0_3] : memref<2x512xf32, #tpu.memory_space<vmem>>, vector<2x512xf32>
    %c0_4 = arith.constant 0 : index
    %c0_5 = arith.constant 0 : index
    %5 = vector.load %arg3[%c0_4, %c0_5] : memref<512x256xf32, #tpu.memory_space<vmem>>, vector<512x256xf32>
    %cst = arith.constant dense<0.000000e+00> : vector<2x256xf32>
    %6 = tpu.matmul %4, %5, %cst {dimension_numbers = #tpu.dot_dimension_numbers<[1], [0], [0], [1], [0, 0, 1, 1], [], []>} : vector<2x512xf32>, vector<512x256xf32>, vector<2x256xf32> -> vector<2x256xf32>
    %7 = arith.addf %3, %6 : vector<2x256xf32>
    %c0_6 = arith.constant 0 : index
    %c0_7 = arith.constant 0 : index
    %8 = vector.load %arg8[%c0_6, %c0_7] : memref<2x256xf32, #tpu.memory_space<vmem>>, vector<2x256xf32>
    tpu.vector_store %arg8[%c0_6, %c0_7], %7 {strides = array<i32>} : memref<2x256xf32, #tpu.memory_space<vmem>>, vector<2x256xf32>,
    %c0_i32_8 = arith.constant 0 : i32
    %9 = arith.cmpi eq, %arg1, %c0_i32_8 : i32
    %10 = arith.extui %9 : i1 to i32
    %c0_i32_9 = arith.constant 0 : i32
    %11 = arith.cmpi ne, %10, %c0_i32_9 : i32
    scf.if %11 {
      %c0_10 = arith.constant 0 : index
      %c0_11 = arith.constant 0 : index
      %12 = vector.load %arg8[%c0_10, %c0_11] : memref<2x256xf32, #tpu.memory_space<vmem>>, vector<2x256xf32>
      %c0_12 = arith.constant 0 : index
      %c0_13 = arith.constant 0 : index
      %13 = vector.load %arg4[%c0_12, %c0_13] : memref<1x256xf32, #tpu.memory_space<vmem>>, vector<1x256xf32>
      %14 = vector.broadcast %13 : vector<1x256xf32> to vector<2x256xf32>
      %15 = arith.addf %12, %14 : vector<2x256xf32>
      %cst_14 = arith.constant 5.000000e-01 : f32
      %16 = vector.broadcast %cst_14 : f32 to vector<2x256xf32>
      %17 = arith.mulf %16, %15 : vector<2x256xf32>
      %cst_15 = arith.constant 4.471500e-02 : f32
      %18 = vector.broadcast %cst_15 : f32 to vector<2x256xf32>
      %19 = arith.mulf %18, %15 : vector<2x256xf32>
      %20 = arith.mulf %19, %15 : vector<2x256xf32>
      %21 = arith.mulf %20, %15 : vector<2x256xf32>
      %22 = arith.addf %15, %21 : vector<2x256xf32>
      %cst_16 = arith.constant 0.797884583 : f32
      %23 = vector.broadcast %cst_16 : f32 to vector<2x256xf32>
      %24 = arith.mulf %23, %22 : vector<2x256xf32>
      %25 = math.tanh %24 : vector<2x256xf32>
      %cst_17 = arith.constant 1.000000e+00 : f32
      %26 = vector.broadcast %cst_17 : f32 to vector<2x256xf32>
      %27 = arith.addf %26, %25 : vector<2x256xf32>
      %28 = arith.mulf %17, %27 : vector<2x256xf32>
      %c0_18 = arith.constant 0 : index
      %c0_19 = arith.constant 0 : index
      %29 = vector.load %arg5[%c0_18, %c0_19] : memref<1x256xf32, #tpu.memory_space<vmem>>, vector<1x256xf32>
      %30 = vector.broadcast %29 : vector<1x256xf32> to vector<2x256xf32>
      %31 = arith.mulf %28, %30 : vector<2x256xf32>
      %c0_20 = arith.constant 0 : index
      %c0_21 = arith.constant 0 : index
      %32 = vector.load %arg6[%c0_20, %c0_21] : memref<1x256xf32, #tpu.memory_space<vmem>>, vector<1x256xf32>
      %33 = vector.broadcast %32 : vector<1x256xf32> to vector<2x256xf32>
      %34 = arith.addf %31, %33 : vector<2x256xf32>
      %c0_22 = arith.constant 0 : index
      %c0_23 = arith.constant 0 : index
      %35 = vector.load %arg7[%c0_22, %c0_23] : memref<2x256xf32, #tpu.memory_space<vmem>>, vector<2x256xf32>
      tpu.vector_store %arg7[%c0_22, %c0_23], %34 {strides = array<i32>} : memref<2x256xf32, #tpu.memory_space<vmem>>, vector<2x256xf32>,
    } else {
    }
    return
  }
  func.func @transform_0(%arg0: i32, %arg1: i32) -> (i32, i32) {
    %c0_i32 = arith.constant 0 : i32
    %c0_i32_0 = arith.constant 0 : i32
    return %c0_i32, %arg1 : i32, i32
  }
  func.func @transform_1(%arg0: i32, %arg1: i32) -> (i32, i32) {
    %c0_i32 = arith.constant 0 : i32
    return %arg1, %arg0 : i32, i32
  }
  func.func @transform_2(%arg0: i32, %arg1: i32) -> (i32, i32) {
    %c0_i32 = arith.constant 0 : i32
    %c0_i32_0 = arith.constant 0 : i32
    return %c0_i32, %arg0 : i32, i32
  }
  func.func @transform_3(%arg0: i32, %arg1: i32) -> (i32, i32) {
    %c0_i32 = arith.constant 0 : i32
    %c0_i32_0 = arith.constant 0 : i32
    return %c0_i32, %arg0 : i32, i32
  }
  func.func @transform_4(%arg0: i32, %arg1: i32) -> (i32, i32) {
    %c0_i32 = arith.constant 0 : i32
    %c0_i32_0 = arith.constant 0 : i32
    return %c0_i32, %arg0 : i32, i32
  }
  func.func @transform_5(%arg0: i32, %arg1: i32) -> (i32, i32) {
    %c0_i32 = arith.constant 0 : i32
    %c0_i32_0 = arith.constant 0 : i32
    return %c0_i32, %arg0 : i32, i32
  }
}

</mosaic_0001>

<bundles_post_ra>
// kernel: tpu_custom_call.1
= control target key start
LH: loop header
LB: loop body
LE: loop exit
PB: predicated region body
PF: predicated region fallthrough
CT: control target
= control target key end

     0   :  { %10 = vsyncpa [#allocation4], 0  ;;  %s773_s0 = inlined_call_operand.hbm [shape: f32[2,512], index: 0, kind: input, shape index: {}]   ;;  %s774_s1 = inlined_call_operand.hbm [shape: f32[512,256], index: 1, kind: input, shape index: {}]   ;;  %s775_s2 = inlined_call_operand.vmem [shape: f32[1,256], index: 2, kind: input, shape index: {}]   ;;  %s776_s3 = inlined_call_operand.vmem [shape: f32[1,256], index: 3, kind: input, shape index: {}]   ;;  %s777_s4 = inlined_call_operand.vmem [shape: f32[1,256], index: 4, kind: input, shape index: {}]   ;;  %s778_s5 = inlined_call_operand.hbm [shape: f32[2,256], index: 5, kind: output, shape index: {}]  }
   0x1   :  { %11 = vsyncpa [#allocation7], 0 }
   0x2   :  { %12 = vsyncpa [#allocation5], 0  ;;  %s661_s18 = smov [#allocation3]   ;;  %s662_s20 = smov [#allocation6]  }
   0x3   :  { %s19_s19 = sshll.u32 %s661_s18, 4  ;;  %s28_s21 = sshll.u32 %s662_s20, 4  ;;  %s20_s19 = int_to_ptr.vmem [resolvable:$true] %s19_s19  ;;  %s698_s21 = int_to_ptr.vmem [resolvable:$true] %s28_s21 }
   0x4   :  { %s589_s24 = scalar_lea.hbm %s773_s0, 128 }
   0x5   :  { %p590_p0 = scmp.ne.s32.totalorder %s773_s0, %s589_s24  ;;  %p593_p1 = scmp.lt.u32.totalorder %s589_s24, %s773_s0 }
   0x7   :  { %p595_p2 = pnand %p593_p1, %p590_p0 }
   0x9   :  { %598 = shalt.err (!%p595_p2)
}
   0xa   :  { %s599_s29 = scalar_lea.vmem %s20_s19, 128  ;;  %p604_p4 = scmp.lt.s32.totalorder %s20_s19, %s20_s19 }
   0xb   :  { %p600_p3 = scmp.ne.s32.totalorder %s20_s19, %s599_s29  ;;  %p605_p5 = scmp.lt.s32.totalorder %s599_s29, %s599_s29 }
   0xd   :  { %p606_p6 = por %p605_p5, %p604_p4 }
   0xf   :  { %p607_p7 = pnand %p606_p6, %p600_p3 }
  0x11   :  { %610 = shalt.err (!%p607_p7)
}
  0x12   :  { %22 = dma.hbm_to_vmem [thread:$0]  %s773_s0, 128, %s20_s19, [#allocation4]  }
  0x13   :  { %s611_s9 = scalar_lea.hbm %s774_s1, 16384 }
  0x14   :  { %p612_p8 = scmp.ne.s32.totalorder %s774_s1, %s611_s9  ;;  %p615_p9 = scmp.lt.u32.totalorder %s611_s9, %s774_s1 }
  0x16   :  { %p617_p10 = pnand %p615_p9, %p612_p8 }
  0x18   :  { %620 = shalt.err (!%p617_p10)
}
  0x19   :  { %s621_s14 = scalar_lea.vmem %s698_s21, 16384  ;;  %p626_p12 = scmp.lt.s32.totalorder %s698_s21, %s698_s21 }
  0x1a   :  { %p622_p11 = scmp.ne.s32.totalorder %s698_s21, %s621_s14  ;;  %p627_p13 = scmp.lt.s32.totalorder %s621_s14, %s621_s14 }
  0x1c   :  { %p628_p0 = por %p627_p13, %p626_p12 }
  0x1e   :  { %p629_p1 = pnand %p628_p0, %p622_p11 }
  0x20   :  { %632 = shalt.err (!%p629_p1)
}
  0x21   :  { %s663_s0 = smov 256   ;;  %s664_s15 = smov 16  }
  0x22   :  { %34 = dma.hbm_to_vmem [thread:$0]  %s774_s1, 16384, %s698_s21, [#allocation7], %s663_s0, %s663_s0, %s664_s15  }
  0x23   :  { %655 = dma.done.wait [#allocation4], 128  }
  0x24   :  { %656 = vsyncadd [#allocation4], 4294967168 }
  0x25   :  { %657 = dma.done.wait [#allocation7], 16384  }
  0x26   :  { %658 = vsyncadd [#allocation7], 4294950912  ;;  %v55_v0 = vld [vmem:[#allocation6 + $0x8] sm:$0xff]  ;;  %v57_v1 = vld [vmem:[#allocation6 + $0x18] sm:$0xff]  ;;  %s667_s22 = smov [#allocation8]  }
  0x27   :  { %v119_v2 = vld [vmem:[#allocation6 + $0x208] sm:$0xff]  ;;  %v449_v3 = vpack.c.bf16 %v57_v1, %v55_v0  ;;  %v121_v4 = vld [vmem:[#allocation6 + $0x218] sm:$0xff]  ;;  %v54_v5 = vld [vmem:[#allocation6] sm:$0xff] }
  0x28   :  { %v56_v6 = vld [vmem:[#allocation6 + $0x10] sm:$0xff]  ;;  %v513_v7 = vpack.c.bf16 %v121_v4, %v119_v2  ;;  %v118_v9 = vld [vmem:[#allocation6 + $0x200] sm:$0xff]  ;;  %v59_v11 = vld [vmem:[#allocation6 + $0x28] sm:$0xff] }
  0x29   :  { %v451_v8 = vpack.c.bf16 %v56_v6, %v54_v5  ;;  %v120_v10 = vld [vmem:[#allocation6 + $0x210] sm:$0xff]  ;;  %450 = vmatprep.subr.bf16.mxu1 %v449_v3  ;;  %v61_v13 = vld [vmem:[#allocation6 + $0x38] sm:$0xff]  ;;  %v123_v14 = vld [vmem:[#allocation6 + $0x228] sm:$0xff] }
  0x2a   :  { %v515_v12 = vpack.c.bf16 %v120_v10, %v118_v9  ;;  %v125_v15 = vld [vmem:[#allocation6 + $0x238] sm:$0xff]  ;;  %514 = vmatprep.subr.bf16.mxu0 %v513_v7  ;;  %v453_v16 = vpack.c.bf16 %v61_v13, %v59_v11  ;;  %v58_v18 = vld [vmem:[#allocation6 + $0x20] sm:$0xff]  ;;  %v60_v19 = vld [vmem:[#allocation6 + $0x30] sm:$0xff] }
  0x2b   :  { %452 = vmatpush1.bf16.msra.mxu1 %v451_v8  ;;  %v517_v17 = vpack.c.bf16 %v125_v15, %v123_v14  ;;  %v122_v20 = vld [vmem:[#allocation6 + $0x220] sm:$0xff]  ;;  %v455_v21 = vpack.c.bf16 %v60_v19, %v58_v18  ;;  %v124_v22 = vld [vmem:[#allocation6 + $0x230] sm:$0xff]  ;;  %v63_v23 = vld [vmem:[#allocation6 + $0x48] sm:$0xff] }
  0x2c   :  { %516 = vmatpush1.bf16.msra.mxu0 %v515_v12  ;;  %v65_v24 = vld [vmem:[#allocation6 + $0x58] sm:$0xff]  ;;  %454 = vmatprep.subr.bf16.mxu1 %v453_v16  ;;  %v519_v25 = vpack.c.bf16 %v124_v22, %v122_v20  ;;  %v127_v27 = vld [vmem:[#allocation6 + $0x248] sm:$0xff]  ;;  %v62_v29 = vld [vmem:[#allocation6 + $0x40] sm:$0xff] }
  0x2d   :  { %518 = vmatprep.subr.bf16.mxu0 %v517_v17  ;;  %v457_v26 = vpack.c.bf16 %v65_v24, %v63_v23  ;;  %v129_v28 = vld [vmem:[#allocation6 + $0x258] sm:$0xff]  ;;  %v64_v31 = vld [vmem:[#allocation6 + $0x50] sm:$0xff]  ;;  %v126_v32 = vld [vmem:[#allocation6 + $0x240] sm:$0xff] }
  0x2e   :  { %v521_v30 = vpack.c.bf16 %v129_v28, %v127_v27  ;;  %v128_v33 = vld [vmem:[#allocation6 + $0x250] sm:$0xff]  ;;  %v459_v34 = vpack.c.bf16 %v64_v31, %v62_v29  ;;  %v67_v35 = vld [vmem:[#allocation6 + $0x68] sm:$0xff]  ;;  %v69_v36 = vld [vmem:[#allocation6 + $0x78] sm:$0xff] }
  0x2f   :  { %456 = vmatpush1.bf16.msra.mxu1 %v455_v21  ;;  %v131_v37 = vld [vmem:[#allocation6 + $0x268] sm:$0xff]  ;;  %v523_v38 = vpack.c.bf16 %v128_v33, %v126_v32  ;;  %v461_v39 = vpack.c.bf16 %v69_v36, %v67_v35  ;;  %v133_v40 = vld [vmem:[#allocation6 + $0x278] sm:$0xff]  ;;  %v66_v41 = vld [vmem:[#allocation6 + $0x60] sm:$0xff] }
  0x30   :  { %520 = vmatpush1.bf16.msra.mxu0 %v519_v25  ;;  %458 = vmatprep.subr.bf16.mxu1 %v457_v26  ;;  %v68_v42 = vld [vmem:[#allocation6 + $0x70] sm:$0xff]  ;;  %v525_v43 = vpack.c.bf16 %v133_v40, %v131_v37  ;;  %v130_v44 = vld [vmem:[#allocation6 + $0x260] sm:$0xff]  ;;  %v71_v46 = vld [vmem:[#allocation6 + $0x88] sm:$0xff] }
  0x31   :  { %522 = vmatprep.subr.bf16.mxu0 %v521_v30  ;;  %v132_v45 = vld [vmem:[#allocation6 + $0x270] sm:$0xff]  ;;  %v73_v47 = vld [vmem:[#allocation6 + $0x98] sm:$0xff]  ;;  %v135_v48 = vld [vmem:[#allocation6 + $0x288] sm:$0xff]  ;;  %v463_v50 = vpack.c.bf16 %v68_v42, %v66_v41 }
  0x32   :  { %v137_v49 = vld [vmem:[#allocation6 + $0x298] sm:$0xff]  ;;  %v527_v51 = vpack.c.bf16 %v132_v45, %v130_v44  ;;  %v465_v52 = vpack.c.bf16 %v73_v47, %v71_v46  ;;  %v70_v53 = vld [vmem:[#allocation6 + $0x80] sm:$0xff]  ;;  %v72_v54 = vld [vmem:[#allocation6 + $0x90] sm:$0xff]  ;;  %v665_v46 = vmov 1983009808  }
  0x33   :  { %460 = vmatpush1.bf16.msra.mxu1 %v459_v34  ;;  %v134_v55 = vld [vmem:[#allocation6 + $0x280] sm:$0xff]  ;;  %v529_v56 = vpack.c.bf16 %v137_v49, %v135_v48  ;;  %v136_v57 = vld [vmem:[#allocation6 + $0x290] sm:$0xff]  ;;  %v75_v58 = vld [vmem:[#allocation6 + $0xa8] sm:$0xff]  ;;  %v467_v62 = vpack.c.bf16 %v72_v54, %v70_v53  ;;  %v185_v47 = vunpack.c.l.s4 %v665_v46  ;;  %v187_v48 = vlaneseq }
  0x34   :  { %524 = vmatpush1.bf16.msra.mxu0 %v523_v38  ;;  %462 = vmatprep.subr.bf16.mxu1 %v461_v39  ;;  %v77_v59 = vld [vmem:[#allocation6 + $0xb8] sm:$0xff]  ;;  %v139_v60 = vld [vmem:[#allocation6 + $0x2a8] sm:$0xff]  ;;  %v531_v63 = vpack.c.bf16 %v136_v57, %v134_v55  ;;  %v74_v1 = vld [vmem:[#allocation6 + $0xa0] sm:$0xff] }
  0x35   :  { %526 = vmatprep.subr.bf16.mxu0 %v525_v43  ;;  %v141_v61 = vld [vmem:[#allocation6 + $0x2b8] sm:$0xff]  ;;  %v469_v0 = vpack.c.bf16 %v77_v59, %v75_v58  ;;  %v76_v2 = vld [vmem:[#allocation6 + $0xb0] sm:$0xff]  ;;  %v138_v3 = vld [vmem:[#allocation6 + $0x2a0] sm:$0xff] }
  0x36   :  { %v533_v4 = vpack.c.bf16 %v141_v61, %v139_v60  ;;  %v140_v5 = vld [vmem:[#allocation6 + $0x2b0] sm:$0xff]  ;;  %v79_v6 = vld [vmem:[#allocation6 + $0xc8] sm:$0xff]  ;;  %v81_v7 = vld [vmem:[#allocation6 + $0xd8] sm:$0xff]  ;;  %v471_v10 = vpack.c.bf16 %v76_v2, %v74_v1  ;;  %v186_v61 = vunpack.c.0.s8 %v185_v47 }
  0x37   :  { %464 = vmatpush1.bf16.msra.mxu1 %v463_v50  ;;  %v143_v8 = vld [vmem:[#allocation6 + $0x2c8] sm:$0xff]  ;;  %v145_v9 = vld [vmem:[#allocation6 + $0x2d8] sm:$0xff]  ;;  %v535_v11 = vpack.c.bf16 %v140_v5, %v138_v3  ;;  %v473_v12 = vpack.c.bf16 %v81_v7, %v79_v6  ;;  %v78_v13 = vld [vmem:[#allocation6 + $0xc0] sm:$0xff] }
  0x38   :  { %528 = vmatpush1.bf16.msra.mxu0 %v527_v51  ;;  %466 = vmatprep.subr.bf16.mxu1 %v465_v52  ;;  %v80_v14 = vld [vmem:[#allocation6 + $0xd0] sm:$0xff]  ;;  %v142_v15 = vld [vmem:[#allocation6 + $0x2c0] sm:$0xff]  ;;  %v537_v16 = vpack.c.bf16 %v145_v9, %v143_v8  ;;  %v83_v18 = vld [vmem:[#allocation6 + $0xe8] sm:$0xff] }
  0x39   :  { %530 = vmatprep.subr.bf16.mxu0 %v529_v56  ;;  %v144_v17 = vld [vmem:[#allocation6 + $0x2d0] sm:$0xff]  ;;  %v85_v19 = vld [vmem:[#allocation6 + $0xf8] sm:$0xff]  ;;  %v147_v20 = vld [vmem:[#allocation6 + $0x2e8] sm:$0xff]  ;;  %v475_v22 = vpack.c.bf16 %v80_v14, %v78_v13 }
  0x3a   :  { %v149_v21 = vld [vmem:[#allocation6 + $0x2f8] sm:$0xff]  ;;  %v539_v23 = vpack.c.bf16 %v144_v17, %v142_v15  ;;  %v477_v24 = vpack.c.bf16 %v85_v19, %v83_v18  ;;  %v82_v25 = vld [vmem:[#allocation6 + $0xe0] sm:$0xff]  ;;  %v84_v26 = vld [vmem:[#allocation6 + $0xf0] sm:$0xff] }
  0x3b   :  { %468 = vmatpush1.bf16.msra.mxu1 %v467_v62  ;;  %v146_v27 = vld [vmem:[#allocation6 + $0x2e0] sm:$0xff]  ;;  %v541_v28 = vpack.c.bf16 %v149_v21, %v147_v20  ;;  %v148_v29 = vld [vmem:[#allocation6 + $0x2f0] sm:$0xff]  ;;  %v87_v30 = vld [vmem:[#allocation6 + $0x108] sm:$0xff]  ;;  %v479_v34 = vpack.c.bf16 %v84_v26, %v82_v25  ;;  %v729_v62 = vshrl.u32 %v187_v48, 7 }
  0x3c   :  { %532 = vmatpush1.bf16.msra.mxu0 %v531_v63  ;;  %470 = vmatprep.subr.bf16.mxu1 %v469_v0  ;;  %v89_v31 = vld [vmem:[#allocation6 + $0x118] sm:$0xff]  ;;  %v151_v32 = vld [vmem:[#allocation6 + $0x308] sm:$0xff]  ;;  %v543_v35 = vpack.c.bf16 %v148_v29, %v146_v27  ;;  %v86_v37 = vld [vmem:[#allocation6 + $0x100] sm:$0xff] }
  0x3d   :  { %534 = vmatprep.subr.bf16.mxu0 %v533_v4  ;;  %v153_v33 = vld [vmem:[#allocation6 + $0x318] sm:$0xff]  ;;  %v481_v36 = vpack.c.bf16 %v89_v31, %v87_v30  ;;  %v88_v38 = vld [vmem:[#allocation6 + $0x110] sm:$0xff]  ;;  %v150_v39 = vld [vmem:[#allocation6 + $0x300] sm:$0xff] }
  0x3e   :  { %v545_v40 = vpack.c.bf16 %v153_v33, %v151_v32  ;;  %v152_v41 = vld [vmem:[#allocation6 + $0x310] sm:$0xff]  ;;  %v91_v42 = vld [vmem:[#allocation6 + $0x128] sm:$0xff]  ;;  %v93_v43 = vld [vmem:[#allocation6 + $0x138] sm:$0xff]  ;;  %v483_v49 = vpack.c.bf16 %v88_v38, %v86_v37 }
  0x3f   :  { %472 = vmatpush1.bf16.msra.mxu1 %v471_v10  ;;  %v155_v44 = vld [vmem:[#allocation6 + $0x328] sm:$0xff]  ;;  %v157_v45 = vld [vmem:[#allocation6 + $0x338] sm:$0xff]  ;;  %v547_v50 = vpack.c.bf16 %v152_v41, %v150_v39  ;;  %v485_v51 = vpack.c.bf16 %v93_v43, %v91_v42  ;;  %v90_v52 = vld [vmem:[#allocation6 + $0x120] sm:$0xff] }
  0x40   :  { %536 = vmatpush1.bf16.msra.mxu0 %v535_v11  ;;  %474 = vmatprep.subr.bf16.mxu1 %v473_v12  ;;  %v92_v53 = vld [vmem:[#allocation6 + $0x130] sm:$0xff]  ;;  %v154_v54 = vld [vmem:[#allocation6 + $0x320] sm:$0xff]  ;;  %v549_v55 = vpack.c.bf16 %v157_v45, %v155_v44  ;;  %v95_v57 = vld [vmem:[#allocation6 + $0x148] sm:$0xff]  ;;  %v732_v11 = vsub.s32 %v186_v61, %v729_v62 }
  0x41   :  { %538 = vmatprep.subr.bf16.mxu0 %v537_v16  ;;  %v156_v56 = vld [vmem:[#allocation6 + $0x330] sm:$0xff]  ;;  %v97_v58 = vld [vmem:[#allocation6 + $0x158] sm:$0xff]  ;;  %v159_v59 = vld [vmem:[#allocation6 + $0x348] sm:$0xff]  ;;  %v487_v63 = vpack.c.bf16 %v92_v53, %v90_v52 }
  0x42   :  { %v161_v60 = vld [vmem:[#allocation6 + $0x358] sm:$0xff]  ;;  %v551_v0 = vpack.c.bf16 %v156_v56, %v154_v54  ;;  %v489_v1 = vpack.c.bf16 %v97_v58, %v95_v57  ;;  %v94_v2 = vld [vmem:[#allocation6 + $0x140] sm:$0xff]  ;;  %v96_v3 = vld [vmem:[#allocation6 + $0x150] sm:$0xff] }
  0x43   :  { %476 = vmatpush1.bf16.msra.mxu1 %v475_v22  ;;  %v158_v4 = vld [vmem:[#allocation6 + $0x340] sm:$0xff]  ;;  %v553_v5 = vpack.c.bf16 %v161_v60, %v159_v59  ;;  %v160_v6 = vld [vmem:[#allocation6 + $0x350] sm:$0xff]  ;;  %v99_v7 = vld [vmem:[#allocation6 + $0x168] sm:$0xff]  ;;  %v491_v12 = vpack.c.bf16 %v96_v3, %v94_v2 }
  0x44   :  { %540 = vmatpush1.bf16.msra.mxu0 %v539_v23  ;;  %478 = vmatprep.subr.bf16.mxu1 %v477_v24  ;;  %v101_v8 = vld [vmem:[#allocation6 + $0x178] sm:$0xff]  ;;  %v163_v9 = vld [vmem:[#allocation6 + $0x368] sm:$0xff]  ;;  %v98_v13 = vld [vmem:[#allocation6 + $0x160] sm:$0xff]  ;;  %v555_v14 = vpack.c.bf16 %v160_v6, %v158_v4 }
  0x45   :  { %542 = vmatprep.subr.bf16.mxu0 %v541_v28  ;;  %v165_v10 = vld [vmem:[#allocation6 + $0x378] sm:$0xff]  ;;  %v493_v15 = vpack.c.bf16 %v101_v8, %v99_v7  ;;  %v100_v16 = vld [vmem:[#allocation6 + $0x170] sm:$0xff]  ;;  %v162_v17 = vld [vmem:[#allocation6 + $0x360] sm:$0xff] }
  0x46   :  { %v164_v18 = vld [vmem:[#allocation6 + $0x370] sm:$0xff]  ;;  %v557_v19 = vpack.c.bf16 %v165_v10, %v163_v9  ;;  %v103_v20 = vld [vmem:[#allocation6 + $0x188] sm:$0xff]  ;;  %v105_v21 = vld [vmem:[#allocation6 + $0x198] sm:$0xff]  ;;  %v495_v27 = vpack.c.bf16 %v100_v16, %v98_v13 }
  0x47   :  { %480 = vmatpush1.bf16.msra.mxu1 %v479_v34  ;;  %v53_v22 = vld [vmem:[#allocation3] sm:$0xff]  ;;  %v167_v23 = vld [vmem:[#allocation6 + $0x388] sm:$0xff]  ;;  %v559_v28 = vpack.c.bf16 %v164_v18, %v162_v17  ;;  %v497_v29 = vpack.c.bf16 %v105_v21, %v103_v20  ;;  %v102_v30 = vld [vmem:[#allocation6 + $0x180] sm:$0xff]  ;;  %v367_v21 = vsub.s32 0, %v729_v62 }
  0x48   :  { %544 = vmatpush1.bf16.msra.mxu0 %v543_v35  ;;  %482 = vmatprep.subr.bf16.mxu1 %v481_v36  ;;  %v169_v24 = vld [vmem:[#allocation6 + $0x398] sm:$0xff]  ;;  %v735_v25 = vrot.slane %v53_v22, %v732_v11  ;;  %v183_v26 = vcombine.high %v53_v22, %v53_v22  ;;  %v104_v31 = vld [vmem:[#allocation6 + $0x190] sm:$0xff]  ;;  %v166_v32 = vld [vmem:[#allocation6 + $0x380] sm:$0xff]  ;;  %v371_v22 = vsub.s32 1, %v729_v62 }
  0x49   :  { %546 = vmatprep.subr.bf16.mxu0 %v545_v40  ;;  %v561_v35 = vpack.c.bf16 %v169_v24, %v167_v23  ;;  %v168_v36 = vld [vmem:[#allocation6 + $0x390] sm:$0xff]  ;;  %v107_v37 = vld [vmem:[#allocation6 + $0x1a8] sm:$0xff]  ;;  %v109_v38 = vld [vmem:[#allocation6 + $0x1b8] sm:$0xff]  ;;  %v499_v42 = vpack.c.bf16 %v104_v31, %v102_v30 }
  0x4a   :  { %v198_v33 = vcombine.high %v735_v25, %v735_v25  ;;  %v740_v34 = vrot.slane %v183_v26, %v732_v11  ;;  %v171_v39 = vld [vmem:[#allocation6 + $0x3a8] sm:$0xff]  ;;  %v173_v40 = vld [vmem:[#allocation6 + $0x3b8] sm:$0xff]  ;;  %v563_v43 = vpack.c.bf16 %v168_v36, %v166_v32  ;;  %v501_v44 = vpack.c.bf16 %v109_v38, %v107_v37  ;;  %v106_v45 = vld [vmem:[#allocation6 + $0x1a0] sm:$0xff] }
  0x4b   :  { %484 = vmatpush1.bf16.msra.mxu1 %v483_v49  ;;  %v108_v46 = vld [vmem:[#allocation6 + $0x1b0] sm:$0xff]  ;;  %v170_v47 = vld [vmem:[#allocation6 + $0x3a0] sm:$0xff]  ;;  %v565_v48 = vpack.c.bf16 %v173_v40, %v171_v39  ;;  %v175_v52 = vld [vmem:[#allocation6 + $0x3c8] sm:$0xff] }
  0x4c   :  { %548 = vmatpush1.bf16.msra.mxu0 %v547_v50  ;;  %486 = vmatprep.subr.bf16.mxu1 %v485_v51  ;;  %v199_v41 = vcombine.high %v740_v34, %v740_v34  ;;  %v172_v49 = vld [vmem:[#allocation6 + $0x3b0] sm:$0xff]  ;;  %v111_v50 = vld [vmem:[#allocation6 + $0x1c8] sm:$0xff]  ;;  %v113_v51 = vld [vmem:[#allocation6 + $0x1d8] sm:$0xff]  ;;  %v503_v54 = vpack.c.bf16 %v108_v46, %v106_v45 }
  0x4d   :  { %550 = vmatprep.subr.bf16.mxu0 %v549_v55  ;;  %268 = vmatprep.mubr.f32.mxu1 %v198_v33  ;;  %v177_v53 = vld [vmem:[#allocation6 + $0x3d8] sm:$0xff]  ;;  %v567_v55 = vpack.c.bf16 %v172_v49, %v170_v47  ;;  %v505_v56 = vpack.c.bf16 %v113_v51, %v111_v50  ;;  %v110_v57 = vld [vmem:[#allocation6 + $0x1c0] sm:$0xff]  ;;  %v112_v58 = vld [vmem:[#allocation6 + $0x1d0] sm:$0xff] }
  0x4e   :  { %339 = vmatprep.mubr.f32.mxu0 %v199_v41  ;;  %v174_v59 = vld [vmem:[#allocation6 + $0x3c0] sm:$0xff]  ;;  %v569_v60 = vpack.c.bf16 %v177_v53, %v175_v52  ;;  %v176_v61 = vld [vmem:[#allocation6 + $0x3d0] sm:$0xff]  ;;  %v181_v2 = vld [vmem:[#allocation6 + $0x3f8] sm:$0xff]  ;;  %v507_v3 = vpack.c.bf16 %v112_v58, %v110_v57 }
  0x4f   :  { %488 = vmatpush1.bf16.msra.mxu1 %v487_v63  ;;  %v115_v63 = vld [vmem:[#allocation6 + $0x1e8] sm:$0xff]  ;;  %v571_v4 = vpack.c.bf16 %v176_v61, %v174_v59  ;;  %v114_v6 = vld [vmem:[#allocation6 + $0x1e0] sm:$0xff]  ;;  %v116_v7 = vld [vmem:[#allocation6 + $0x1f0] sm:$0xff] }
  0x50   :  { %552 = vmatpush1.bf16.msra.mxu0 %v551_v0  ;;  %490 = vmatprep.subr.bf16.mxu1 %v489_v1  ;;  %v117_v0 = vld [vmem:[#allocation6 + $0x1f8] sm:$0xff]  ;;  %v179_v1 = vld [vmem:[#allocation6 + $0x3e8] sm:$0xff]  ;;  %v178_v9 = vld [vmem:[#allocation6 + $0x3e0] sm:$0xff] }
  0x51   :  { %554 = vmatprep.subr.bf16.mxu0 %v553_v5  ;;  %v509_v5 = vpack.c.bf16 %v117_v0, %v115_v63  ;;  %v573_v8 = vpack.c.bf16 %v181_v2, %v179_v1  ;;  %v180_v10 = vld [vmem:[#allocation6 + $0x3f0] sm:$0xff] }
  0x52   :  { %v575_v13 = vpack.c.bf16 %v180_v10, %v178_v9  ;;  %v363_v23 = vld [vmem:[%s775_s2] sm:$0x3] }
  0x53   :  { %492 = vmatpush1.bf16.msra.mxu1 %v491_v12  ;;  %v511_v12 = vpack.c.bf16 %v116_v7, %v114_v6  ;;  %v392_v38 = vld [vmem:[%s776_s3] sm:$0x3]  ;;  %s439_s3 = sshll.u32 %s667_s22, 4  ;;  %s440_s3 = int_to_ptr.vmem [resolvable:$true] %s439_s3 }
  0x54   :  { %556 = vmatpush1.bf16.msra.mxu0 %v555_v14  ;;  %494 = vmatprep.subr.bf16.mxu1 %v493_v15  ;;  %v666_v14 = vmov 0.0   ;;  %v412_v39 = vld [vmem:[%s777_s4] sm:$0x3]  ;;  %v397_v40 = vrot.slane %v392_v38, %v367_v21  ;;  %v401_v41 = vrot.slane %v392_v38, %v371_v22  ;;  %s633_s4 = scalar_lea.vmem %s440_s3, 64  ;;  %p638_p3 = scmp.lt.s32.totalorder %s440_s3, %s440_s3 }
  0x55   :  { %558 = vmatprep.subr.bf16.mxu0 %v557_v19  ;;  %51 = vst [vmem:[#allocation2] sm:$0xf] %v666_v14  ;;  %p634_p2 = scmp.ne.s32.totalorder %s440_s3, %s633_s4  ;;  %p639_p4 = scmp.lt.s32.totalorder %s633_s4, %s633_s4 }
  0x57   :  { %496 = vmatpush1.bf16.msra.mxu1 %v495_v27  ;;  %v368_v27 = vrot.slane %v363_v23, %v367_v21  ;;  %p640_p5 = por %p639_p4, %p638_p3 }
  0x58   :  { %560 = vmatpush1.bf16.msra.mxu0 %v559_v28  ;;  %498 = vmatprep.subr.bf16.mxu1 %v497_v29  ;;  %v372_v28 = vrot.slane %v363_v23, %v371_v22 }
  0x59   :  { %562 = vmatprep.subr.bf16.mxu0 %v561_v35  ;;  %p641_p6 = pnand %p640_p5, %p634_p2 }
  0x5a   :  { %v373_v30 = vcombine.low %v368_v27, %v372_v28 }
  0x5b   :  { %500 = vmatpush1.bf16.msra.mxu1 %v499_v42  ;;  %v417_v42 = vrot.slane %v412_v39, %v367_v21 }
  0x5c   :  { %564 = vmatpush1.bf16.msra.mxu0 %v563_v43  ;;  %502 = vmatprep.subr.bf16.mxu1 %v501_v44  ;;  %v380_v31 = vrot.slane %v373_v30, %v732_v11  ;;  %v421_v43 = vrot.slane %v412_v39, %v371_v22  ;;  %v402_v44 = vcombine.low %v397_v40, %v401_v41 }
  0x5d   :  { %566 = vmatprep.subr.bf16.mxu0 %v565_v48 }
  0x5e   :  { %v422_v45 = vcombine.low %v417_v42, %v421_v43  ;;  %v409_v49 = vrot.slane %v402_v44, %v732_v11 }
  0x5f   :  { %504 = vmatpush1.bf16.msra.mxu1 %v503_v54 }
  0x60   :  { %568 = vmatpush1.bf16.msra.mxu0 %v567_v55  ;;  %506 = vmatprep.subr.bf16.mxu1 %v505_v56  ;;  %v429_v51 = vrot.slane %v422_v45, %v732_v11 }
  0x61   :  { %570 = vmatprep.subr.bf16.mxu0 %v569_v60 }
  0x63   :  { %508 = vmatpush1.bf16.msra.mxu1 %v507_v3 }
  0x64   :  { %572 = vmatpush1.bf16.msra.mxu0 %v571_v4  ;;  %510 = vmatprep.subr.bf16.mxu1 %v509_v5 }
  0x65   :  { %574 = vmatprep.subr.bf16.mxu0 %v573_v8 }
  0x67   :  { %512 = vmatpush1.bf16.msra.mxu1 %v511_v12 }
  0x68   :  { %576 = vmatpush1.bf16.msra.mxu0 %v575_v13 }
  0x6a   :  { %269 = vmatmul.mubr.f32.vlgmr.msra.gmra.mrb[0].mxu1 %v735_v25  ;;  %v52_v25 = vld [vmem:[#allocation2] sm:$0xf] }
  0x6b   :  { %340 = vmatmul.mubr.f32.vlgmr.msra.gmra.mrb[0].mxu0 %v740_v34 }
 0x13d   :  { %v270_v15 = vpop.f32.mrb[0].mxu1 }
 0x13e   :  { %v341_v16 = vpop.f32.mrb[0].mxu0  ;;  %v272_v17 = vpop.f32.mrb[1].mxu1 }
 0x13f   :  { %v342_v18 = vadd.f32 %v341_v16, %v270_v15  ;;  %v343_v19 = vpop.f32.mrb[1].mxu0 }
 0x140   :  { %v344_v20 = vadd.f32 %v343_v19, %v272_v17 }
 0x142   :  { %v348_v24 = vcombine.low %v342_v18, %v344_v20 }
 0x144   :  { %v355_v26 = vrot.slane %v348_v24, %v732_v11 }
 0x146   :  { %v357_v29 = vadd.f32 %v355_v26, %v52_v25 }
 0x148   :  { %358 = vst [vmem:[#allocation2] sm:$0xf] %v357_v29 }
 0x14f   :  { %v362_v32 = vld [vmem:[#allocation2] sm:$0xf] }
 0x150   :  { %v382_v33 = vadd.f32 %v380_v31, %v362_v32 }
 0x152   :  { %v384_v34 = vmul.f32 0.044715, %v382_v33  ;;  %v383_v47 = vmul.f32 0.5, %v382_v33 }
 0x154   :  { %v385_v35 = vmul.f32 %v384_v34, %v382_v33 }
 0x156   :  { %v386_v62 = vmul.f32 %v385_v35, %v382_v33 }
 0x158   :  { %v387_v36 = vadd.f32 %v386_v62, %v382_v33 }
 0x15a   :  { %v388_v37 = vmul.f32 0.7978846, %v387_v36 }
 0x15c   :  { %587 = vtanh.f32 %v388_v37 }
 0x166   :  { %v588_v46 = vpop.eup %587 }
 0x167   :  { %v390_v48 = vadd.f32 1.0, %v588_v46 }
 0x169   :  { %v391_v50 = vmul.f32 %v390_v48, %v383_v47 }
 0x16b   :  { %v411_v52 = vmul.f32 %v409_v49, %v391_v50 }
 0x16d   :  { %v431_v53 = vadd.f32 %v429_v51, %v411_v52 }
 0x16f   :  { %432 = vst [vmem:[#allocation8] sm:$0xf] %v431_v53 }
 0x170   :  { %644 = shalt.err (!%p641_p6)
}
 0x171   :  { %s645_s25 = scalar_lea.hbm %s778_s5, 64 }
 0x172   :  { %p646_p7 = scmp.ne.s32.totalorder %s778_s5, %s645_s25  ;;  %p649_p8 = scmp.lt.u32.totalorder %s645_s25, %s778_s5 }
 0x174   :  { %p651_p9 = pnand %p649_p8, %p646_p7 }
 0x176   :  { %654 = shalt.err (!%p651_p9)
}
 0x177   :  { %442 = dma.vmem_to_hbm [thread:$0]  %s440_s3, 64, %s778_s5, [#allocation5]  }
 0x178   :  { %659 = dma.done.wait [#allocation5], 64  }
 0x179   :  { %660 = vsyncadd [#allocation5], 4294967232 }
 0x17a   :  { %446 = vsyncpa [#allocation4], 1 }
 0x17b   :  { %447 = vsyncpa [#allocation7], 1 }
 0x17c   :  { %448 = vsyncpa [#allocation5], 1 }

</bundles_post_ra>
